<compile_context>
chip_gen: v5e
topology: v5e:2x2
jax: 0.10.0
libtpu: 0.0.40
codegen_flags: <defaults>
</compile_context>

<pallas_src>
import functools

import jax
import jax.numpy as jnp
from jax.experimental import pallas as pl
from jax.experimental.pallas import tpu as pltpu


def _dkd_kernel(zs_ref, zt_ref, tgt_ref, out_ref, *,
                alpha, beta, temperature, batch_size, tile_rows):
    inv_t = jnp.float32(1.0 / temperature)
    t_sq = jnp.float32(temperature * temperature)
    zero = jnp.float32(0.0)
    tiny = jnp.float32(1e-30)

    zs = zs_ref[...].astype(jnp.float32) * inv_t           # (TB, C)
    zt = zt_ref[...].astype(jnp.float32) * inv_t           # (TB, C)
    tgt = tgt_ref[...]                                      # (TB, 1) int32
    TB, C = zs.shape

    # one-hot target mask (scatter_ equivalent) from iota-vs-target compare
    col = jax.lax.broadcasted_iota(jnp.int32, (TB, C), 1)
    gt_mask = (col == tgt)                                   # (TB, C) bool

    # validity mask for the ragged last tile (no wrapper-side padding anymore)
    row = (pl.program_id(0) * tile_rows
           + jax.lax.broadcasted_iota(jnp.int32, (TB, 1), 0))
    valid = row < batch_size                                 # (TB, 1) bool

    # ---- single shared exp pass per tensor; keep shifted logits for reuse --
    m_s = jnp.max(zs, axis=1, keepdims=True)
    zs_c = zs - m_s                                          # reused in NCKD diff
    e_s = jnp.exp(zs_c)                                      # EUP pass #1
    e_s_tgt = jnp.sum(jnp.where(gt_mask, e_s, zero), axis=1, keepdims=True)
    sum_s = jnp.sum(e_s, axis=1, keepdims=True)
    e_s_oth = jnp.maximum(sum_s - e_s_tgt, tiny)             # derived, clamped

    m_t = jnp.max(zt, axis=1, keepdims=True)
    zt_c = zt - m_t                                          # reused in NCKD diff
    e_t = jnp.exp(zt_c)                                      # EUP pass #2
    w = jnp.where(gt_mask, zero, e_t)                        # reused twice below
    e_t_oth_raw = jnp.sum(w, axis=1, keepdims=True)
    sum_t = jnp.sum(e_t, axis=1, keepdims=True)
    e_t_tgt = sum_t - e_t_oth_raw                            # derived
    e_t_oth = jnp.maximum(e_t_oth_raw, tiny)

    # ---- TCKD: binary (target vs rest) KL, all (TB, 1) row-vector math -----
    inv_sum_s = 1.0 / sum_s
    inv_sum_t = 1.0 / sum_t
    ps1 = e_s_tgt * inv_sum_s
    ps2 = e_s_oth * inv_sum_s
    pt1 = e_t_tgt * inv_sum_t
    pt2 = e_t_oth_raw * inv_sum_t

    def xlogy_kl(p, log_q):  # p * (log p - log q) with 0*log0 := 0 (torch.kl_div)
        safe_p = jnp.where(p > 0, p, jnp.float32(1.0))
        return jnp.where(p > 0, p * (jnp.log(safe_p) - log_q), zero)

    tckd_row = xlogy_kl(pt1, jnp.log(ps1)) + xlogy_kl(pt2, jnp.log(ps2))

    # ---- NCKD in log-domain, reusing zs_c / zt_c / e_t ---------------------
    # softmax(z/T - 1000*gt): the target column underflows to exactly 0 in f32
    # (matches the f32 PyTorch reference), so the partition function is the
    # non-target exp sum already computed above.
    log_den = jnp.log(e_t_oth) - jnp.log(e_s_oth)            # (TB, 1), folded
    diff = (zt_c - zs_c) - log_den                           # (TB, C)
    nckd_row = jnp.sum(w * diff, axis=1, keepdims=True) / e_t_oth

    # TODO(synk): if a v7x bundle dump shows the VALU/XLU slots saturated,
    # offload the (TB, C) row reductions to the idle MXU via ones-matvecs.

    scale = t_sq / jnp.float32(batch_size)
    tckd = jnp.sum(jnp.where(valid, tckd_row, zero)) * scale
    nckd = jnp.sum(jnp.where(valid, nckd_row, zero)) * scale
    out_ref[0, 0] = jnp.float32(alpha) * tckd + jnp.float32(beta) * nckd


def _round_up(x, m):
    return (x + m - 1) // m * m


def _vmem_budgets():
    """(tile-sizing budget, vmem_limit_bytes) chosen per TPU generation."""
    try:
        phys = int(pltpu.get_tpu_info().vmem_capacity_bytes)
    except Exception:
        phys = 64 * 2 ** 20                      # conservative (v7x-sized)
    if phys >= 100 * 2 ** 20:                    # v5e / v6e: 128 MiB physical
        return 48 * 2 ** 20, 56 * 2 ** 20
    return 24 * 2 ** 20, 40 * 2 ** 20            # v7x: 64 MiB physical


def dkd_loss_pallas(z_s, z_t, target, alpha=1.0, beta=2.0, temperature=1.0):
    # Glue: mimic DKD.forward — if target is 2-D, take argmax over classes.
    if target.ndim == 2:
        target = jnp.argmax(target, axis=1)
    target = target.reshape(-1).astype(jnp.int32)

    B, C = z_s.shape
    tile_budget, vmem_limit = _vmem_budgets()

    # Per-row VMEM footprint: 2 logit tensors x 2 pipeline buffers of f32 I/O
    # plus ~8 full-width f32 temporaries inside the body (e_s, e_t, w, diff,
    # gt_mask, shifted logits, ...).
    bytes_per_row = C * 4 * (2 * 2 + 8)
    tb_cap = max(8, (tile_budget // bytes_per_row) // 8 * 8)
    TB = int(min(1024, tb_cap, _round_up(B, 8)))
    if B > 8:
        # keep >= 2 grid steps so the "parallel" axis spans both v7x TCs
        TB = min(TB, _round_up((B + 1) // 2, 8))
    TB = max(int(TB), 8)
    num_tiles = pl.cdiv(B, TB)

    # No jnp.pad of the logit tensors: the ragged last tile is masked in-kernel.
    target2d = target[:, None]                               # (B, 1)

    kernel = functools.partial(
        _dkd_kernel, alpha=float(alpha), beta=float(beta),
        temperature=float(temperature), batch_size=B, tile_rows=TB)

    # TODO(synk): for vocab-scale C (>= 64k) add a second "arbitrary" grid axis
    # over C with flash-style online accumulation of (max, sum_exp, e_tgt).
    partials = pl.pallas_call(
        kernel,
        out_shape=jax.ShapeDtypeStruct((num_tiles, 1), jnp.float32),
        grid=(num_tiles,),
        in_specs=[
            pl.BlockSpec((TB, C), lambda i: (i, 0)),
            pl.BlockSpec((TB, C), lambda i: (i, 0)),
            pl.BlockSpec((TB, 1), lambda i: (i, 0)),
        ],
        out_specs=pl.BlockSpec((1, 1), lambda i: (i, 0),
                               memory_space=pltpu.MemorySpace.SMEM),
        compiler_params=pltpu.CompilerParams(
            dimension_semantics=("parallel",),
            vmem_limit_bytes=int(vmem_limit)),
    )(z_s, z_t, target2d)
    return jnp.sum(partials)


def dkd_loss_ref(z_s, z_t, target, alpha=1.0, beta=2.0, temperature=1.0):
    # pure-JAX reference for sanity checking
    if target.ndim == 2:
        target = jnp.argmax(target, axis=1)
    target = target.reshape(-1)
    B, C = z_s.shape
    gt = jax.nn.one_hot(target, C, dtype=jnp.float32)
    other = 1.0 - gt
    T = temperature
    ps = jax.nn.softmax(z_s / T, axis=1)
    pt = jax.nn.softmax(z_t / T, axis=1)
    ps_cat = jnp.stack([jnp.sum(ps * gt, 1), jnp.sum(ps * other, 1)], axis=1)
    pt_cat = jnp.stack([jnp.sum(pt * gt, 1), jnp.sum(pt * other, 1)], axis=1)
    tckd = jnp.sum(pt_cat * (jnp.log(pt_cat) - jnp.log(ps_cat))) / B * T ** 2
    zs2 = z_s / T - 1000.0 * gt
    zt2 = z_t / T - 1000.0 * gt
    pt2 = jax.nn.softmax(zt2, axis=1)
    log_ps2 = jax.nn.log_softmax(zs2, axis=1)
    term = jnp.where(pt2 > 0,
                     pt2 * (jnp.log(jnp.where(pt2 > 0, pt2, 1.0)) - log_ps2),
                     0.0)
    nckd = jnp.sum(term) / B * T ** 2
    return alpha * tckd + beta * nckd


class DKD:
    """JAX/Pallas port of the PyTorch DKD module (no learnable params)."""

    def __init__(self, alpha=1.0, beta=2.0, temperature=1.0):
        self.alpha = alpha
        self.beta = beta
        self.temperature = temperature

    def __call__(self, z_s, z_t, target):
        return dkd_loss_pallas(
            z_s, z_t, target, self.alpha, self.beta, self.temperature
        )


if __name__ == "__main__":
    key = jax.random.PRNGKey(0)

    dkd = DKD(alpha=1.0, beta=2.0, temperature=4.0)

    # case 1: small, lane-aligned batch (single tile)
    k1, k2, k3, key = jax.random.split(key, 4)
    B, C = 8, 128
    z_s = jax.random.normal(k1, (B, C), dtype=jnp.float32)
    z_t = jax.random.normal(k2, (B, C), dtype=jnp.float32)
    target = jax.random.randint(k3, (B,), 0, C, dtype=jnp.int32)
    loss = jax.block_until_ready(dkd(z_s, z_t, target))
    ref = dkd_loss_ref(z_s, z_t, target, 1.0, 2.0, 4.0)
    assert jnp.allclose(loss, ref, rtol=1e-4, atol=1e-5), (loss, ref)

    # case 2: ragged batch (exercises the un-padded last tile + 2-step grid)
    k1, k2, k3, key = jax.random.split(key, 4)
    B2 = 13
    z_s2 = jax.random.normal(k1, (B2, C), dtype=jnp.float32)
    z_t2 = jax.random.normal(k2, (B2, C), dtype=jnp.float32)
    target2 = jax.random.randint(k3, (B2,), 0, C, dtype=jnp.int32)
    loss2 = jax.block_until_ready(dkd(z_s2, z_t2, target2))
    ref2 = dkd_loss_ref(z_s2, z_t2, target2, 1.0, 2.0, 4.0)
    assert jnp.allclose(loss2, ref2, rtol=1e-4, atol=1e-5), (loss2, ref2)

    print("KERNEL_OK")
</pallas_src>

<mosaic_0001>
module attributes {stable_mosaic.version = 11 : i64} {
  func.func @_dkd_kernel(%arg0: i32, %arg1: memref<8x128xf32, #tpu.memory_space<vmem>>, %arg2: memref<8x128xf32, #tpu.memory_space<vmem>>, %arg3: memref<8x1xi32, #tpu.memory_space<vmem>>, %arg4: memref<1x1xf32, #tpu.memory_space<smem>>) attributes {dimension_semantics = [#tpu.dimension_semantics<parallel>], iteration_bounds = array<i64: 1>, scalar_prefetch = 0 : i64, scratch_operands = 0 : i64, tpu.core_type = #tpu.core_type<tc>, window_params = [{transform_indices = @transform_0, window_bounds = array<i64: 8, 128>}, {transform_indices = @transform_1, window_bounds = array<i64: 8, 128>}, {transform_indices = @transform_2, window_bounds = array<i64: 8, 1>}, {transform_indices = @transform_3, window_bounds = array<i64: 1, 1>}]} {
    %c0 = arith.constant 0 : index
    %c0_0 = arith.constant 0 : index
    %0 = vector.load %arg1[%c0, %c0_0] : memref<8x128xf32, #tpu.memory_space<vmem>>, vector<8x128xf32>
    %cst = arith.constant 2.500000e-01 : f32
    %1 = vector.broadcast %cst : f32 to vector<8x128xf32>
    %2 = arith.mulf %0, %1 : vector<8x128xf32>
    %c0_1 = arith.constant 0 : index
    %c0_2 = arith.constant 0 : index
    %3 = vector.load %arg2[%c0_1, %c0_2] : memref<8x128xf32, #tpu.memory_space<vmem>>, vector<8x128xf32>
    %cst_3 = arith.constant 2.500000e-01 : f32
    %4 = vector.broadcast %cst_3 : f32 to vector<8x128xf32>
    %5 = arith.mulf %3, %4 : vector<8x128xf32>
    %c0_4 = arith.constant 0 : index
    %c0_5 = arith.constant 0 : index
    %6 = vector.load %arg3[%c0_4, %c0_5] : memref<8x1xi32, #tpu.memory_space<vmem>>, vector<8x1xi32>
    %7 = tpu.iota {dimensions = array<i32: 1>} : vector<8x128xi32>
    %8 = vector.broadcast %6 : vector<8x1xi32> to vector<8x128xi32>
    %9 = arith.cmpi eq, %7, %8 : vector<8x128xi32>
    %c8_i32 = arith.constant 8 : i32
    %10 = arith.muli %arg0, %c8_i32 : i32
    %11 = tpu.iota {dimensions = array<i32: 0>} : vector<8x1xi32>
    %12 = vector.broadcast %10 : i32 to vector<8x1xi32>
    %13 = arith.addi %12, %11 : vector<8x1xi32>
    %c8_i32_6 = arith.constant 8 : i32
    %14 = vector.broadcast %c8_i32_6 : i32 to vector<8x1xi32>
    %15 = arith.cmpi slt, %13, %14 : vector<8x1xi32>
    %cst_7 = arith.constant dense<0xFF800000> : vector<8xf32>
    %16 = vector.multi_reduction <maximumf>, %2, %cst_7 [1] : vector<8x128xf32> to vector<8xf32>
    %17 = vector.shape_cast %16 : vector<8xf32> to vector<8x1xf32>
    %18 = vector.broadcast %17 : vector<8x1xf32> to vector<8x128xf32>
    %19 = arith.subf %2, %18 : vector<8x128xf32>
    %20 = math.exp %19 : vector<8x128xf32>
    %cst_8 = arith.constant 0.000000e+00 : f32
    %21 = vector.broadcast %cst_8 : f32 to vector<8x128xf32>
    %22 = arith.select %9, %20, %21 : vector<8x128xi1>, vector<8x128xf32>
    %cst_9 = arith.constant dense<0.000000e+00> : vector<8xf32>
    %23 = vector.multi_reduction <add>, %22, %cst_9 [1] : vector<8x128xf32> to vector<8xf32>
    %24 = vector.shape_cast %23 : vector<8xf32> to vector<8x1xf32>
    %cst_10 = arith.constant dense<0.000000e+00> : vector<8xf32>
    %25 = vector.multi_reduction <add>, %20, %cst_10 [1] : vector<8x128xf32> to vector<8xf32>
    %26 = vector.shape_cast %25 : vector<8xf32> to vector<8x1xf32>
    %27 = arith.subf %26, %24 : vector<8x1xf32>
    %cst_11 = arith.constant 1.000000e-30 : f32
    %28 = vector.broadcast %cst_11 : f32 to vector<8x1xf32>
    %29 = arith.maximumf %27, %28 : vector<8x1xf32>
    %cst_12 = arith.constant dense<0xFF800000> : vector<8xf32>
    %30 = vector.multi_reduction <maximumf>, %5, %cst_12 [1] : vector<8x128xf32> to vector<8xf32>
    %31 = vector.shape_cast %30 : vector<8xf32> to vector<8x1xf32>
    %32 = vector.broadcast %31 : vector<8x1xf32> to vector<8x128xf32>
    %33 = arith.subf %5, %32 : vector<8x128xf32>
    %34 = math.exp %33 : vector<8x128xf32>
    %cst_13 = arith.constant 0.000000e+00 : f32
    %35 = vector.broadcast %cst_13 : f32 to vector<8x128xf32>
    %36 = arith.select %9, %35, %34 : vector<8x128xi1>, vector<8x128xf32>
    %cst_14 = arith.constant dense<0.000000e+00> : vector<8xf32>
    %37 = vector.multi_reduction <add>, %36, %cst_14 [1] : vector<8x128xf32> to vector<8xf32>
    %38 = vector.shape_cast %37 : vector<8xf32> to vector<8x1xf32>
    %cst_15 = arith.constant dense<0.000000e+00> : vector<8xf32>
    %39 = vector.multi_reduction <add>, %34, %cst_15 [1] : vector<8x128xf32> to vector<8xf32>
    %40 = vector.shape_cast %39 : vector<8xf32> to vector<8x1xf32>
    %41 = arith.subf %40, %38 : vector<8x1xf32>
    %cst_16 = arith.constant 1.000000e-30 : f32
    %42 = vector.broadcast %cst_16 : f32 to vector<8x1xf32>
    %43 = arith.maximumf %38, %42 : vector<8x1xf32>
    %cst_17 = arith.constant 1.000000e+00 : f32
    %44 = vector.broadcast %cst_17 : f32 to vector<8x1xf32>
    %45 = arith.divf %44, %26 : vector<8x1xf32>
    %cst_18 = arith.constant 1.000000e+00 : f32
    %46 = vector.broadcast %cst_18 : f32 to vector<8x1xf32>
    %47 = arith.divf %46, %40 : vector<8x1xf32>
    %48 = arith.mulf %24, %45 : vector<8x1xf32>
    %49 = arith.mulf %29, %45 : vector<8x1xf32>
    %50 = arith.mulf %41, %47 : vector<8x1xf32>
    %51 = arith.mulf %38, %47 : vector<8x1xf32>
    %52 = math.log %48 : vector<8x1xf32>
    %cst_19 = arith.constant 0.000000e+00 : f32
    %53 = vector.broadcast %cst_19 : f32 to vector<8x1xf32>
    %54 = arith.cmpf ogt, %50, %53 : vector<8x1xf32>
    %cst_20 = arith.constant 1.000000e+00 : f32
    %55 = vector.broadcast %cst_20 : f32 to vector<8x1xf32>
    %56 = arith.select %54, %50, %55 : vector<8x1xi1>, vector<8x1xf32>
    %cst_21 = arith.constant 0.000000e+00 : f32
    %57 = vector.broadcast %cst_21 : f32 to vector<8x1xf32>
    %58 = arith.cmpf ogt, %50, %57 : vector<8x1xf32>
    %59 = math.log %56 : vector<8x1xf32>
    %60 = arith.subf %59, %52 : vector<8x1xf32>
    %61 = arith.mulf %50, %60 : vector<8x1xf32>
    %cst_22 = arith.constant 0.000000e+00 : f32
    %62 = vector.broadcast %cst_22 : f32 to vector<8x1xf32>
    %63 = arith.select %58, %61, %62 : vector<8x1xi1>, vector<8x1xf32>
    %64 = math.log %49 : vector<8x1xf32>
    %cst_23 = arith.constant 0.000000e+00 : f32
    %65 = vector.broadcast %cst_23 : f32 to vector<8x1xf32>
    %66 = arith.cmpf ogt, %51, %65 : vector<8x1xf32>
    %cst_24 = arith.constant 1.000000e+00 : f32
    %67 = vector.broadcast %cst_24 : f32 to vector<8x1xf32>
    %68 = arith.select %66, %51, %67 : vector<8x1xi1>, vector<8x1xf32>
    %cst_25 = arith.constant 0.000000e+00 : f32
    %69 = vector.broadcast %cst_25 : f32 to vector<8x1xf32>
    %70 = arith.cmpf ogt, %51, %69 : vector<8x1xf32>
    %71 = math.log %68 : vector<8x1xf32>
    %72 = arith.subf %71, %64 : vector<8x1xf32>
    %73 = arith.mulf %51, %72 : vector<8x1xf32>
    %cst_26 = arith.constant 0.000000e+00 : f32
    %74 = vector.broadcast %cst_26 : f32 to vector<8x1xf32>
    %75 = arith.select %70, %73, %74 : vector<8x1xi1>, vector<8x1xf32>
    %76 = arith.addf %63, %75 : vector<8x1xf32>
    %77 = math.log %43 : vector<8x1xf32>
    %78 = math.log %29 : vector<8x1xf32>
    %79 = arith.subf %77, %78 : vector<8x1xf32>
    %80 = arith.subf %33, %19 : vector<8x128xf32>
    %81 = vector.broadcast %79 : vector<8x1xf32> to vector<8x128xf32>
    %82 = arith.subf %80, %81 : vector<8x128xf32>
    %83 = arith.mulf %36, %82 : vector<8x128xf32>
    %cst_27 = arith.constant dense<0.000000e+00> : vector<8xf32>
    %84 = vector.multi_reduction <add>, %83, %cst_27 [1] : vector<8x128xf32> to vector<8xf32>
    %85 = vector.shape_cast %84 : vector<8xf32> to vector<8x1xf32>
    %86 = arith.divf %85, %43 : vector<8x1xf32>
    %cst_28 = arith.constant 1.600000e+01 : f32
    %cst_29 = arith.constant 8.000000e+00 : f32
    %87 = arith.divf %cst_28, %cst_29 : f32
    %cst_30 = arith.constant 0.000000e+00 : f32
    %88 = vector.broadcast %cst_30 : f32 to vector<8x1xf32>
    %89 = arith.select %15, %76, %88 : vector<8x1xi1>, vector<8x1xf32>
    %90 = vector.shape_cast %89 : vector<8x1xf32> to vector<1x8x1xf32>
    %cst_31 = arith.constant dense<0.000000e+00> : vector<1xf32>
    %91 = vector.multi_reduction <add>, %90, %cst_31 [1, 2] : vector<1x8x1xf32> to vector<1xf32>
    %92 = vector.shape_cast %91 : vector<1xf32> to vector<1x1x1xf32>
    %93 = vector.extract %92[0, 0, 0] : f32 from vector<1x1x1xf32>
    %94 = arith.mulf %93, %87 : f32
    %cst_32 = arith.constant 0.000000e+00 : f32
    %95 = vector.broadcast %cst_32 : f32 to vector<8x1xf32>
    %96 = arith.select %15, %86, %95 : vector<8x1xi1>, vector<8x1xf32>
    %97 = vector.shape_cast %96 : vector<8x1xf32> to vector<1x8x1xf32>
    %cst_33 = arith.constant dense<0.000000e+00> : vector<1xf32>
    %98 = vector.multi_reduction <add>, %97, %cst_33 [1, 2] : vector<1x8x1xf32> to vector<1xf32>
    %99 = vector.shape_cast %98 : vector<1xf32> to vector<1x1x1xf32>
    %100 = vector.extract %99[0, 0, 0] : f32 from vector<1x1x1xf32>
    %101 = arith.mulf %100, %87 : f32
    %cst_34 = arith.constant 1.000000e+00 : f32
    %102 = arith.mulf %cst_34, %94 : f32
    %cst_35 = arith.constant 2.000000e+00 : f32
    %103 = arith.mulf %cst_35, %101 : f32
    %104 = arith.addf %102, %103 : f32
    %c0_36 = arith.constant 0 : index
    %c0_37 = arith.constant 0 : index
    %105 = memref.load %arg4[%c0_36, %c0_37] : memref<1x1xf32, #tpu.memory_space<smem>>
    memref.store %104, %arg4[%c0_36, %c0_37] : memref<1x1xf32, #tpu.memory_space<smem>>
    return
  }
  func.func @transform_0(%arg0: i32) -> (i32, i32) {
    %c0_i32 = arith.constant 0 : i32
    %c0_i32_0 = arith.constant 0 : i32
    return %arg0, %c0_i32 : i32, i32
  }
  func.func @transform_1(%arg0: i32) -> (i32, i32) {
    %c0_i32 = arith.constant 0 : i32
    %c0_i32_0 = arith.constant 0 : i32
    return %arg0, %c0_i32 : i32, i32
  }
  func.func @transform_2(%arg0: i32) -> (i32, i32) {
    %c0_i32 = arith.constant 0 : i32
    %c0_i32_0 = arith.constant 0 : i32
    return %arg0, %c0_i32 : i32, i32
  }
  func.func @transform_3(%arg0: i32) -> (i32, i32) {
    %c0_i32 = arith.constant 0 : i32
    %c0_i32_0 = arith.constant 0 : i32
    return %arg0, %c0_i32 : i32, i32
  }
}

</mosaic_0001>

<bundles_post_ra>
// kernel: tpu_custom_call.1
= control target key start
LH: loop header
LB: loop body
LE: loop exit
PB: predicated region body
PF: predicated region fallthrough
CT: control target
= control target key end

     0   :  { %8 = vsyncpa [#allocation3], 0  ;;  %s317_s0 = inlined_call_operand.vmem [shape: f32[8,128], index: 0, kind: input, shape index: {}]   ;;  %s318_s1 = inlined_call_operand.hbm [shape: f32[8,128], index: 1, kind: input, shape index: {}]   ;;  %s319_s2 = inlined_call_operand.vmem [shape: s32[8,1], index: 2, kind: input, shape index: {}]   ;;  %s320_s3 = inlined_call_operand.hbm [shape: f32[1,1], index: 3, kind: output, shape index: {}]  }
   0x1   :  { %9 = vsyncpa [#allocation4], 0  ;;  %s17_s14 = sshll.u32 %s318_s1, 4  ;;  %s264_s15 = smov [#allocation2]   ;;  %s18_s14 = int_to_ptr.hbm [resolvable:$true] %s17_s14 }
   0x2   :  { %s19_s16 = sshll.u32 %s264_s15, 4  ;;  %s20_s16 = int_to_ptr.vmem [resolvable:$true] %s19_s16 }
   0x3   :  { %22 = dma.hbm_to_vmem [thread:$0]  %s18_s14, 128, %s20_s16, [#allocation3]  }
   0x4   :  { %260 = dma.done.wait [#allocation3], 128  }
   0x5   :  { %261 = vsyncadd [#allocation3], 4294967168  ;;  %v265_v0 = vmov 0   ;;  %v29_v1 = vld [vmem:[%s317_s0] sm:$0xff]  ;;  %v34_v8 = vlaneseq  ;;  %vm149_vm11 = vcmask 7168   ;;  %s182_s23 = sshll.u32 %s320_s3, 4  ;;  %s183_s23 = int_to_ptr.hbm [resolvable:$true] %s182_s23 }
   0x6   :  { %200 = vset.pattern.permute.xlu1 %v265_v0  ;;  %201 = vset.pattern.permute.xlu0 %v265_v0  ;;  %v33_v2 = vld [vmem:[%s319_s2] sm:$0xff]  ;;  %v30_v3 = vmul.f32 0.25, %v29_v1  ;;  %s266_s27 = smov [#allocation5]  }
   0x7   :  { %37 = vperm.xlu1 %200, %v33_v2   ;;  %v31_v4 = vld [vmem:[#allocation2] sm:$0xff]  ;;  %v35_v10 = vand.u32 127, %v34_v8 }
   0x8   :  { %46 = vmax.xlane.f32.xlu0 %v30_v3  ;;  %v32_v5 = vmul.f32 0.25, %v31_v4 }
  0x10   :  { %58 = vmax.xlane.f32.xlu0 %v32_v5 }
  0x79   :  { %v38_v11 = vpop.permute.xlu1 %37 }
  0x7a   :  { %vm39_vm0 = vcmp.eq.s32.totalorder %v35_v10, %v38_v11 }
  0x7b   :  { %v47_v6 = vpop.xlane.xlu0 %46 }
  0x7c   :  { %v296_v7 = vsub.f32 %v30_v3, %v47_v6 }
  0x7e   :  { %v49_v9 = vmul.f32 1.442695, %v296_v7 }
  0x80   :  { %202 = vpow2.f32 %v49_v9 }
  0x83   :  { %v59_v12 = vpop.xlane.xlu0 %58 }
  0x84   :  { %v60_v13 = vsub.f32 %v32_v5, %v59_v12 }
  0x86   :  { %v203_v14 = vpop.eup %202  ;;  %v61_v15 = vmul.f32 1.442695, %v60_v13  ;;  %v128_v16 = vsub.f32 %v60_v13, %v296_v7 }
  0x87   :  { %54 = vadd.xlane.f32.xlu2 %v203_v14  ;;  %v51_v17 = vsel %vm39_vm0, %v203_v14, 0.0 }
  0x88   :  { %204 = vpow2.f32 %v61_v15  ;;  %52 = vadd.xlane.f32.xlu1 %v51_v17 }
  0x8e   :  { %v205_v18 = vpop.eup %204 }
  0x8f   :  { %66 = vadd.xlane.f32.xlu0 %v205_v18  ;;  %v63_v19 = vsel %vm39_vm0, 0.0, %v205_v18 }
  0x90   :  { %64 = vadd.xlane.f32.xlu2 %v63_v19 }
  0xfa   :  { %v55_v20 = vpop.xlane.xlu2 %54 }
  0xfb   :  { %206 = vrcp.f32 %v55_v20  ;;  %v53_v21 = vpop.xlane.xlu1 %52  ;;  %v79_v33 = vand.u32 2147483647, %v55_v20  ;;  %v81_v34 = vand.u32 2147483648, %v55_v20  ;;  %vm75_vm2 = vweird.f32 %v55_v20 }
  0xfc   :  { %v56_v22 = vsub.f32 %v55_v20, %v53_v21 }
  0xfd   :  { %vm80_vm4 = vcmp.eq.f32.partialorder %v79_v33, 8.507059e+37  ;;  %v82_v40 = vor.u32 1.1754944e-38, %v81_v34 }
  0xfe   :  { %v57_v24 = vmax.f32 %v56_v22, 1e-30 }
 0x101   :  { %v207_v23 = vpop.eup %206 }
 0x102   :  { %v71_v25 = vmul.f32 %v207_v23, %v55_v20  ;;  %v67_v26 = vpop.xlane.xlu0 %66  ;;  %vm76_vm1 = vweird.f32 %v207_v23 }
 0x103   :  { %208 = vrcp.f32 %v67_v26  ;;  %v65_v27 = vpop.xlane.xlu2 %64  ;;  %vm77_vm3 = vmor %vm75_vm2, %vm76_vm1  ;;  %v94_v41 = vand.u32 2147483647, %v67_v26  ;;  %v96_v42 = vand.u32 2147483648, %v67_v26  ;;  %vm90_vm6 = vweird.f32 %v67_v26 }
 0x104   :  { %v72_v28 = vsub.f32 1.0, %v71_v25  ;;  %v300_v29 = vmax.f32 %v65_v27, 1e-30  ;;  %210 = vlog2.f32 %v57_v24  ;;  %v68_v50 = vsub.f32 %v67_v26, %v65_v27 }
 0x105   :  { %v97_v49 = vor.u32 1.1754944e-38, %v96_v42  ;;  %vm95_vm8 = vcmp.eq.f32.partialorder %v94_v41, 8.507059e+37 }
 0x106   :  { %v73_v30 = vmul.f32 %v207_v23, %v72_v28  ;;  %212 = vlog2.f32 %v300_v29  ;;  %v144_v18 = vand.u32 2147483648, %v300_v29  ;;  %vm138_vm13 = vweird.f32 %v300_v29 }
 0x108   :  { %v74_v31 = vadd.f32 %v207_v23, %v73_v30 }
 0x109   :  { %v209_v32 = vpop.eup %208 }
 0x10a   :  { %v86_v35 = vmul.f32 %v209_v32, %v67_v26  ;;  %v211_v36 = vpop.eup %210  ;;  %v78_v37 = vsel %vm77_vm3, %v207_v23, %v74_v31  ;;  %vm91_vm5 = vweird.f32 %v209_v32 }
 0x10b   :  { %v126_v43 = vmul.f32 0.6931472, %v211_v36  ;;  %v83_v46 = vsel %vm80_vm4, %v82_v40, %v78_v37  ;;  %vm92_vm7 = vmor %vm90_vm6, %vm91_vm5 }
 0x10c   :  { %v87_v38 = vsub.f32 1.0, %v86_v35  ;;  %v213_v39 = vpop.eup %212  ;;  %v100_v51 = vmul.f32 %v83_v46, %v53_v21  ;;  %v101_v54 = vmul.f32 %v83_v46, %v57_v24  ;;  %v145_v21 = vor.u32 1.1754944e-38, %v144_v18 }
 0x10d   :  { %v124_v45 = vmul.f32 0.6931472, %v213_v39 }
 0x10e   :  { %v88_v44 = vmul.f32 %v209_v32, %v87_v38  ;;  %214 = vlog2.f32 %v100_v51 }
 0x10f   :  { %v127_v48 = vsub.f32 %v124_v45, %v126_v43  ;;  %216 = vlog2.f32 %v101_v54 }
 0x110   :  { %v89_v47 = vadd.f32 %v209_v32, %v88_v44 }
 0x111   :  { %v129_v53 = vsub.f32 %v128_v16, %v127_v48 }
 0x112   :  { %v93_v52 = vsel %vm92_vm7, %v209_v32, %v89_v47 }
 0x113   :  { %v98_v55 = vsel %vm95_vm8, %v97_v49, %v93_v52  ;;  %v130_v58 = vmul.f32 %v129_v53, %v63_v19  ;;  %v142_v19 = vand.u32 2147483647, %v300_v29 }
 0x114   :  { %v102_v56 = vmul.f32 %v98_v55, %v68_v50  ;;  %v103_v57 = vmul.f32 %v98_v55, %v65_v27  ;;  %v215_v61 = vpop.eup %214 }
 0x115   :  { %131 = vadd.xlane.f32.xlu2 %v130_v58  ;;  %v217_v62 = vpop.eup %216  ;;  %v105_v1 = vmul.f32 0.6931472, %v215_v61  ;;  %vm143_vm15 = vcmp.eq.f32.partialorder %v142_v19, 8.507059e+37 }
 0x116   :  { %vm106_vm9 = vcmp.gt.f32.partialorder %v102_v56, 0.0  ;;  %vm115_vm10 = vcmp.gt.f32.partialorder %v103_v57, 0.0  ;;  %v114_v3 = vmul.f32 0.6931472, %v217_v62 }
 0x117   :  { %v107_v59 = vsel %vm106_vm9, %v102_v56, 1.0  ;;  %v116_v60 = vsel %vm115_vm10, %v103_v57, 1.0 }
 0x118   :  { %218 = vlog2.f32 %v107_v59 }
 0x119   :  { %220 = vlog2.f32 %v116_v60 }
 0x11a   :  { %222 = vrcp.f32 %v300_v29 }
 0x11e   :  { %v219_v63 = vpop.eup %218 }
 0x11f   :  { %v221_v0 = vpop.eup %220  ;;  %v109_v2 = vmul.f32 0.6931472, %v219_v63 }
 0x120   :  { %v118_v4 = vmul.f32 0.6931472, %v221_v0  ;;  %v223_v13 = vpop.eup %222 }
 0x121   :  { %v110_v5 = vsub.f32 %v109_v2, %v105_v1  ;;  %v134_v14 = vmul.f32 %v223_v13, %v300_v29  ;;  %vm139_vm12 = vweird.f32 %v223_v13 }
 0x122   :  { %v119_v6 = vsub.f32 %v118_v4, %v114_v3  ;;  %vm140_vm14 = vmor %vm138_vm13, %vm139_vm12 }
 0x123   :  { %v111_v7 = vmul.f32 %v110_v5, %v102_v56  ;;  %v135_v15 = vsub.f32 1.0, %v134_v14 }
 0x124   :  { %v120_v8 = vmul.f32 %v119_v6, %v103_v57 }
 0x125   :  { %v112_v9 = vsel %vm106_vm9, %v111_v7, 0.0  ;;  %v136_v16 = vmul.f32 %v223_v13, %v135_v15 }
 0x126   :  { %v121_v10 = vsel %vm115_vm10, %v120_v8, 0.0 }
 0x127   :  { %v122_v11 = vadd.f32 %v121_v10, %v112_v9  ;;  %v137_v17 = vadd.f32 %v223_v13, %v136_v16 }
 0x129   :  { %v150_v12 = vsel %vm149_vm11, %v122_v11, 0.0  ;;  %v141_v20 = vsel %vm140_vm14, %v223_v13, %v137_v17 }
 0x12a   :  { %151 = vadd.xlane.f32.xlu0 %v150_v12  ;;  %v146_v22 = vsel %vm143_vm15, %v145_v21, %v141_v20 }
 0x188   :  { %v132_v23 = vpop.xlane.xlu2 %131 }
 0x189   :  { %v147_v24 = vmul.f32 %v146_v22, %v132_v23 }
 0x18b   :  { %v162_v25 = vsel %vm149_vm11, %v147_v24, 0.0 }
 0x18c   :  { %163 = vadd.xlane.f32.xlu2 %v162_v25 }
 0x19d   :  { %v152_v26 = vpop.xlane.xlu0 %151 }
 0x19e   :  { %v153_v27 = vrot.slane %v152_v26, 4 }
 0x1a0   :  { %v154_v28 = vadd.f32 %v153_v27, %v152_v26 }
 0x1a2   :  { %v155_v30 = vrot.slane %v154_v28, 2 }
 0x1a4   :  { %v156_v31 = vadd.f32 %v155_v30, %v154_v28 }
 0x1a6   :  { %v157_v32 = vrot.slane %v156_v31, 1 }
 0x1a8   :  { %v158_v33 = vadd.f32 %v157_v32, %v156_v31 }
 0x1aa   :  { %193 = vpush %v158_v33 }
 0x1db   :  { %s194_s0 = spop %193 }
 0x1dc   :  { %s160_s24 = smul.f32 2.0, %s194_s0 }
 0x1ff   :  { %v164_v34 = vpop.xlane.xlu2 %163 }
 0x200   :  { %v165_v29 = vrot.slane %v164_v34, 4 }
 0x202   :  { %v166_v35 = vadd.f32 %v165_v29, %v164_v34 }
 0x204   :  { %v167_v36 = vrot.slane %v166_v35, 2 }
 0x206   :  { %v168_v37 = vadd.f32 %v167_v36, %v166_v35 }
 0x208   :  { %v169_v38 = vrot.slane %v168_v37, 1 }
 0x20a   :  { %v170_v39 = vadd.f32 %v169_v38, %v168_v37 }
 0x20c   :  { %195 = vpush %v170_v39 }
 0x23d   :  { %s196_s1 = spop %195 }
 0x23e   :  { %s172_s2 = smul.f32 2.0, %s196_s1 }
 0x240   :  { %s173_s25 = smul.f32 2.0, %s172_s2 }
 0x242   :  { %s174_s26 = sadd.f32 %s173_s25, %s160_s24 }
 0x244   :  { %176 = sst [smem:[#allocation5]] %s174_s26 }
 0x245   :  { %185 = dma.smem_to_hbm %s266_s27, 16, %s183_s23, [#allocation4]  }
 0x246   :  { %262 = dma.done.wait [#allocation4], 16  }
 0x247   :  { %263 = vsyncadd [#allocation4], 4294967280 }
 0x248   :  { %190 = sfence }
 0x249   :  { %191 = vsyncpa [#allocation3], 1 }
 0x24a   :  { %192 = vsyncpa [#allocation4], 1 }

</bundles_post_ra>
